<compile_context>
chip_gen: v7x
topology: tpu7x:2x2x1
jax: 0.10.0
libtpu: 0.0.40
codegen_flags: <defaults>
</compile_context>

<pallas_src>
import functools

import jax
import jax.numpy as jnp
from jax import lax
from jax.experimental import pallas as pl
from jax.experimental.pallas import tpu as pltpu


# -----------------------------------------------------------------------------
# Kernel: per grid step (Nb images)
#   in-kernel im2col -> one matmul -> (bias+act fake-quant) epilogue -> store.
# -----------------------------------------------------------------------------
def _qconv_kernel(scal_ref, x_ref, qw_ref, pre_ref, o_ref, patch_ref, *,
                  nb, cin, hw, w_cols, kh_taps, kw_taps, pad, a_qmax,
                  quantize_act):
    # scal_ref : SMEM f32[5]  [w_scale, w_zp, a_scale, a_zp, 1/a_scale]
    # x_ref    : VMEM bf16 (Nb, Cin, SP)  row-padded, flattened, +pad-shifted x
    # qw_ref   : VMEM f32  (Cout, K)      integer weight levels (tap-major/ci-minor)
    # pre_ref  : VMEM f32  (Cout, 1)      bias/a_scale + a_zp  (or plain bias)
    # o_ref    : VMEM f32  (Nb, Cout, HW)
    # patch_ref: VMEM f32  (K, Nb*HW)     scratch patch slab
    w_scale = scal_ref[0]
    w_zp = scal_ref[1]
    a_scale = scal_ref[2]
    a_zp = scal_ref[3]
    inv_a = scal_ref[4]

    # Weight dequant, redone every step (tiny) -> no cross-step state, so the
    # grid axis can stay "parallel" on multi-TensorCore chips.
    wdeq = (qw_ref[...] - w_zp) * w_scale                       # (Cout, K) f32

    # Per-kw edge masks: W is unpadded in the flattened input, so taps that
    # reach across the left/right image border must be zeroed (they would
    # otherwise read the neighbouring row's pixels).
    col = lax.broadcasted_iota(jnp.int32, (cin, hw), 1) % w_cols
    keep_masks = []
    for kw in range(kw_taps):
        lo, hi = pad - kw, w_cols + pad - kw
        if lo <= 0 and hi >= w_cols:
            keep_masks.append(None)                             # interior tap
        else:
            keep_masks.append((col >= lo) & (col < hi))

    # In-kernel im2col: KH*KW static flat shifts per image into the lane-dense
    # (K, Nb*HW) patch slab.  All offsets are static Python ints -> plain
    # lane-rotate + masked stores; no HBM-side patch materialisation.
    for n in range(nb):
        xi = x_ref[n].astype(jnp.float32)                       # (Cin, SP)
        for kh in range(kh_taps):
            for kw in range(kw_taps):
                off = kh * w_cols + kw
                sl = xi[:, off:off + hw]                        # (Cin, HW)
                keep = keep_masks[kw]
                if keep is not None:
                    sl = jnp.where(keep, sl, jnp.zeros_like(sl))
                t = kh * kw_taps + kw
                patch_ref[t * cin:(t + 1) * cin, n * hw:(n + 1) * hw] = sl

    # ONE matmul per grid step: (Cout, K) @ (K, Nb*HW), f32 accumulation.
    acc = jnp.dot(wdeq, patch_ref[...], preferred_element_type=jnp.float32)

    if quantize_act:
        # bias folded into the pre-offset: q = clip(round(y/s + (b/s + zp)), 0, qmax)
        q = jnp.clip(jnp.round(acc * inv_a + pre_ref[...]), 0.0, a_qmax)
        res = (q - a_zp) * a_scale
    else:
        res = acc + pre_ref[...]

    res = res.astype(o_ref.dtype)                               # (Cout, Nb*HW)
    for n in range(nb):
        o_ref[n] = res[:, n * hw:(n + 1) * hw]                  # 256-lane-dense stores


# -----------------------------------------------------------------------------
# Wrapper.
# -----------------------------------------------------------------------------
def _round_up(v, m):
    return (v + m - 1) // m * m


def _vmem_budget_and_limit():
    """Generation-aware VMEM working-set budget + scoped-VMEM limit (bytes)."""
    try:
        cap = int(pltpu.get_tpu_info().vmem_capacity_bytes)     # 128MiB v5e/v6e, 64MiB v7x
    except Exception:
        cap = 64 << 20                                          # conservative fallback
    budget = min(cap // 4, 48 << 20)         # ~16 MiB on v7x, ~32 MiB on v5e/v6e
    limit = min(cap * 3 // 4, max(32 << 20, 2 * budget))
    return budget, int(limit)


def qmodule_forward(x_nchw, qweight_oihw, bias, w_scale, w_zp, a_scale, a_zp,
                    a_n_bits=8, padding=1, max_unrolled_batch=16):
    """QModule.forward for the nn.Conv2d case (stride=1, dilation=1, groups=1)."""
    N, Cin, H, W = x_nchw.shape
    Cout, Cin_w, KH, KW = qweight_oihw.shape
    assert Cin_w == Cin
    # This kernel covers the stride-1 "same" conv the module instance uses.
    assert 2 * padding == KH - 1 == KW - 1, "kernel assumes a 'same' odd conv"
    # TODO(synk): Conv1d/Conv3d/Linear, stride/dilation/groups != 1 and the
    # quantizer-calibration / reconstruction paths are not implemented here.
    HW = H * W
    K = KH * KW * Cin

    # --- wrapper glue (one XLA fusion: pad rows + flatten + shift + cast) ---
    # The kernel does the im2col; the wrapper only provides a row-padded,
    # flattened (stride-W) copy of x, prepended with `padding` zeros so every
    # tap's flat shift  off = kh*W + kw  is a non-negative static slice.
    x_hpad = jnp.pad(x_nchw, ((0, 0), (0, 0), (padding, padding), (0, 0)))
    x_flat = x_hpad.reshape(N, Cin, (H + 2 * padding) * W)
    need = max(padding + (H + 2 * padding) * W,                 # data extent
               (KH - 1) * W + (KW - 1) + HW)                    # max slice end
    SP = _round_up(need, 128)
    x_flat = jnp.pad(x_flat, ((0, 0), (0, 0),
                              (padding, SP - padding - x_flat.shape[-1])))
    x_flat = x_flat.astype(jnp.bfloat16)                        # halve input HBM traffic
    # TODO(synk): feed bf16 activations straight from the producer layer to
    # drop the wrapper-side f32->bf16 conversion pass entirely.

    # Weight as (Cout, K), tap-major / cin-minor, matching the patch-slab rows.
    qw_mat = jnp.transpose(qweight_oihw, (0, 2, 3, 1)).reshape(Cout, K)
    qw_mat = qw_mat.astype(jnp.float32)

    bias_f = (jnp.zeros((Cout,), jnp.float32) if bias is None
              else bias.astype(jnp.float32))

    quantize_act = a_n_bits is not None
    if quantize_act:
        a_scale_f = jnp.asarray(a_scale, jnp.float32)
        a_scale_safe = jnp.maximum(a_scale_f, 1e-12)   # guard (a_scale==0 degenerate)
        inv_a = 1.0 / a_scale_safe
        a_zp_f = jnp.asarray(a_zp, jnp.float32)
        a_qmax = float(2 ** a_n_bits - 1)
        pre = bias_f * inv_a + a_zp_f                  # folded bias pre-offset
    else:
        a_scale_safe = jnp.float32(1.0)
        a_zp_f = jnp.float32(0.0)
        inv_a = jnp.float32(1.0)
        a_qmax = 0.0
        pre = bias_f
    scalars = jnp.stack([jnp.asarray(w_scale, jnp.float32),
                         jnp.asarray(w_zp, jnp.float32),
                         a_scale_safe, a_zp_f, inv_a])
    pre = pre.reshape(Cout, 1)

    # --- batch-block sizing against a generation-aware VMEM budget ---
    budget, vmem_limit = _vmem_budget_and_limit()
    per_img = (2 * _round_up(Cin, 8) * SP * 2        # x block (double-buffered, bf16)
               + 2 * _round_up(Cout, 8) * HW * 4     # out block (double-buffered, f32)
               + _round_up(K, 8) * HW * 4)           # patch slab scratch (f32)
    Nb = int(max(1, min(N, budget // max(per_img, 1), max_unrolled_batch)))
    Np = _round_up(N, Nb)                            # pad batch: no ragged last step
    if Np != N:
        x_flat = jnp.pad(x_flat, ((0, Np - N), (0, 0), (0, 0)))

    kernel = functools.partial(
        _qconv_kernel, nb=Nb, cin=Cin, hw=HW, w_cols=W,
        kh_taps=KH, kw_taps=KW, pad=padding, a_qmax=a_qmax,
        quantize_act=quantize_act)

    out = pl.pallas_call(
        kernel,
        out_shape=jax.ShapeDtypeStruct((Np, Cout, HW), jnp.float32),
        grid_spec=pltpu.PrefetchScalarGridSpec(
            num_scalar_prefetch=0,
            grid=(Np // Nb,),
            in_specs=[
                pl.BlockSpec(memory_space=pltpu.SMEM),              # scalars
                pl.BlockSpec((Nb, Cin, SP), lambda n: (n, 0, 0)),   # flattened input
                pl.BlockSpec((Cout, K), lambda n: (0, 0)),          # quantized weight
                pl.BlockSpec((Cout, 1), lambda n: (0, 0)),          # bias/zp pre-offset
            ],
            out_specs=pl.BlockSpec((Nb, Cout, HW), lambda n: (n, 0, 0)),
            scratch_shapes=[pltpu.VMEM((K, Nb * HW), jnp.float32)],  # patch slab
        ),
        compiler_params=pltpu.CompilerParams(
            dimension_semantics=("parallel",),   # no cross-step state -> megacore OK
            vmem_limit_bytes=vmem_limit,
        ),
    )(scalars, x_flat, qw_mat, pre)

    # TODO(synk): emit bf16 output if downstream tolerates fake-quant values
    # rounded to bf16 (halves the output HBM write).
    return out[:N].reshape(N, Cout, H, W)


# -----------------------------------------------------------------------------
# Deterministic synthetic "quantizer" setup (mirrors UniformQuantizer min/max).
# -----------------------------------------------------------------------------
def uniform_quantize(w, n_bits):
    qmax = float(2 ** n_bits - 1)
    wmin = jnp.minimum(w.min(), 0.0)
    wmax = jnp.maximum(w.max(), 0.0)
    scale = jnp.maximum((wmax - wmin) / qmax, 1e-12)
    zp = jnp.round(-wmin / scale)
    q = jnp.clip(jnp.round(w / scale) + zp, 0.0, qmax)
    return q, scale, zp


if __name__ == "__main__":
    key = jax.random.PRNGKey(0)
    k_x, k_w, k_b = jax.random.split(key, 3)

    # Small Conv2d-like config: N=2, Cin=4, H=W=16, Cout=8, 3x3, stride=1, pad=1.
    N, Cin, H, W = 2, 4, 16, 16
    Cout, KH, KW = 8, 3, 3
    w_bits, a_bits = 8, 8

    x = jax.random.normal(k_x, (N, Cin, H, W), dtype=jnp.float32)
    origin_weight = 0.2 * jax.random.normal(k_w, (Cout, Cin, KH, KW), dtype=jnp.float32)
    bias = 0.1 * jax.random.normal(k_b, (Cout,), dtype=jnp.float32)

    # Weight quantizer (inited): integer levels + scale/zero_point.
    qweight, w_scale, w_zp = uniform_quantize(origin_weight, w_bits)
    w_deq = (qweight - w_zp) * w_scale

    # f32 reference conv (PyTorch-parity path); also used as the synthetic
    # activation-quantizer "calibration" data (min/max -> scale/zero_point).
    ref_conv = lax.conv_general_dilated(
        x, w_deq, window_strides=(1, 1), padding=((1, 1), (1, 1)),
        dimension_numbers=("NCHW", "OIHW", "NCHW"),
    ) + bias[None, :, None, None]

    a_qmax = float(2 ** a_bits - 1)
    omin = jnp.minimum(ref_conv.min(), 0.0)
    omax = jnp.maximum(ref_conv.max(), 0.0)
    a_scale = jnp.maximum((omax - omin) / a_qmax, 1e-12)
    a_zp = jnp.round(-omin / a_scale)

    # Pallas kernel run.
    out = qmodule_forward(x, qweight, bias, w_scale, w_zp, a_scale, a_zp,
                          a_n_bits=a_bits, padding=1)
    out = jax.block_until_ready(out)

    # Reference fake-quant.
    ref_q = jnp.clip(jnp.round(ref_conv / a_scale) + a_zp, 0.0, a_qmax)
    ref_out = (ref_q - a_zp) * a_scale

    max_diff = float(jnp.max(jnp.abs(out - ref_out)))
    assert out.shape == (N, Cout, H, W)
    # bf16-rounded activations (HBM side) vs the f32 reference can flip a value
    # by at most one activation-quant level at a rounding boundary.
    assert max_diff <= 1.01 * float(a_scale) + 1e-6, f"max diff {max_diff} too large"

    print("KERNEL_OK")
</pallas_src>

<mosaic_0001>
module attributes {stable_mosaic.version = 11 : i64} {
  func.func @_qconv_kernel(%arg0: i32, %arg1: memref<5xf32, #tpu.memory_space<smem>>, %arg2: memref<2x4x384xbf16, #tpu.memory_space<vmem>>, %arg3: memref<8x36xf32, #tpu.memory_space<vmem>>, %arg4: memref<8x1xf32, #tpu.memory_space<vmem>>, %arg5: memref<2x8x256xf32, #tpu.memory_space<vmem>>, %arg6: memref<36x512xf32, #tpu.memory_space<vmem>>) attributes {dimension_semantics = [#tpu.dimension_semantics<parallel>], iteration_bounds = array<i64: 1>, scalar_prefetch = 0 : i64, scratch_operands = 1 : i64, tpu.core_type = #tpu.core_type<tc>, window_params = [{transform_indices = @transform_0, window_bounds = array<i64: 5>}, {transform_indices = @transform_1, window_bounds = array<i64: 2, 4, 384>}, {pipeline_mode = #tpu.pipeline_mode<synchronous>, transform_indices = @transform_2, window_bounds = array<i64: 8, 36>}, {pipeline_mode = #tpu.pipeline_mode<synchronous>, transform_indices = @transform_3, window_bounds = array<i64: 8, 1>}, {transform_indices = @transform_4, window_bounds = array<i64: 2, 8, 256>}]} {
    %c0 = arith.constant 0 : index
    %0 = memref.load %arg1[%c0] : memref<5xf32, #tpu.memory_space<smem>>
    %c1 = arith.constant 1 : index
    %1 = memref.load %arg1[%c1] : memref<5xf32, #tpu.memory_space<smem>>
    %c2 = arith.constant 2 : index
    %2 = memref.load %arg1[%c2] : memref<5xf32, #tpu.memory_space<smem>>
    %c3 = arith.constant 3 : index
    %3 = memref.load %arg1[%c3] : memref<5xf32, #tpu.memory_space<smem>>
    %c4 = arith.constant 4 : index
    %4 = memref.load %arg1[%c4] : memref<5xf32, #tpu.memory_space<smem>>
    %c0_0 = arith.constant 0 : index
    %c0_1 = arith.constant 0 : index
    %5 = vector.load %arg3[%c0_0, %c0_1] : memref<8x36xf32, #tpu.memory_space<vmem>>, vector<8x36xf32>
    %6 = vector.broadcast %1 : f32 to vector<8x36xf32>
    %7 = arith.subf %5, %6 : vector<8x36xf32>
    %8 = vector.broadcast %0 : f32 to vector<8x36xf32>
    %9 = arith.mulf %7, %8 : vector<8x36xf32>
    %10 = tpu.iota {dimensions = array<i32: 1>} : vector<4x256xi32>
    %c16_i32 = arith.constant 16 : i32
    %c0_i32 = arith.constant 0 : i32
    %11 = arith.cmpi eq, %c16_i32, %c0_i32 : i32
    %c1_i32 = arith.constant 1 : i32
    %12 = arith.select %11, %c1_i32, %c16_i32 : i32
    %13 = vector.broadcast %12 : i32 to vector<4x256xi32>
    %14 = arith.remsi %10, %13 : vector<4x256xi32>
    %c0_i32_2 = arith.constant 0 : i32
    %15 = vector.broadcast %c0_i32_2 : i32 to vector<4x256xi32>
    %16 = arith.cmpi ne, %14, %15 : vector<4x256xi32>
    %c0_i32_3 = arith.constant 0 : i32
    %17 = vector.broadcast %c0_i32_3 : i32 to vector<4x256xi32>
    %18 = arith.cmpi slt, %14, %17 : vector<4x256xi32>
    %c0_i32_4 = arith.constant 0 : i32
    %19 = arith.cmpi slt, %12, %c0_i32_4 : i32
    %20 = vector.broadcast %19 : i1 to vector<4x256xi1>
    %21 = vector.broadcast %20 : vector<4x256xi1> to vector<4x256xi1>
    %22 = arith.xori %18, %21 : vector<4x256xi1>
    %23 = arith.andi %22, %16 : vector<4x256xi1>
    %24 = vector.broadcast %12 : i32 to vector<4x256xi32>
    %25 = arith.addi %14, %24 : vector<4x256xi32>
    %26 = arith.select %23, %25, %14 : vector<4x256xi1>, vector<4x256xi32>
    %c1_i32_5 = arith.constant 1 : i32
    %27 = vector.broadcast %c1_i32_5 : i32 to vector<4x256xi32>
    %28 = arith.cmpi sge, %26, %27 : vector<4x256xi32>
    %c17_i32 = arith.constant 17 : i32
    %29 = vector.broadcast %c17_i32 : i32 to vector<4x256xi32>
    %30 = arith.cmpi slt, %26, %29 : vector<4x256xi32>
    %31 = arith.andi %28, %30 : vector<4x256xi1>
    %c-1_i32 = arith.constant -1 : i32
    %32 = vector.broadcast %c-1_i32 : i32 to vector<4x256xi32>
    %33 = arith.cmpi sge, %26, %32 : vector<4x256xi32>
    %c15_i32 = arith.constant 15 : i32
    %34 = vector.broadcast %c15_i32 : i32 to vector<4x256xi32>
    %35 = arith.cmpi slt, %26, %34 : vector<4x256xi32>
    %36 = arith.andi %33, %35 : vector<4x256xi1>
    %c0_6 = arith.constant 0 : index
    %c0_7 = arith.constant 0 : index
    %c0_8 = arith.constant 0 : index
    %37 = vector.load %arg2[%c0_6, %c0_7, %c0_8] : memref<2x4x384xbf16, #tpu.memory_space<vmem>>, vector<1x4x384xbf16>
    %38 = vector.shape_cast %37 : vector<1x4x384xbf16> to vector<4x384xbf16>
    %39 = arith.extf %38 : vector<4x384xbf16> to vector<4x384xf32>
    %40 = vector.extract_strided_slice %39 {offsets = [0, 0], sizes = [4, 256], strides = [1, 1]} : vector<4x384xf32> to vector<4x256xf32>
    %cst = arith.constant 0.000000e+00 : f32
    %41 = vector.broadcast %cst : f32 to vector<4x256xf32>
    %42 = arith.select %31, %40, %41 : vector<4x256xi1>, vector<4x256xf32>
    %c0_9 = arith.constant 0 : index
    %c0_10 = arith.constant 0 : index
    %43 = vector.load %arg6[%c0_9, %c0_10] : memref<36x512xf32, #tpu.memory_space<vmem>>, vector<4x256xf32>
    tpu.vector_store %arg6[%c0_9, %c0_10], %42 {strides = array<i32>} : memref<36x512xf32, #tpu.memory_space<vmem>>, vector<4x256xf32>,
    %44 = vector.extract_strided_slice %39 {offsets = [0, 1], sizes = [4, 256], strides = [1, 1]} : vector<4x384xf32> to vector<4x256xf32>
    %c4_11 = arith.constant 4 : index
    %c0_12 = arith.constant 0 : index
    %45 = vector.load %arg6[%c4_11, %c0_12] : memref<36x512xf32, #tpu.memory_space<vmem>>, vector<4x256xf32>
    tpu.vector_store %arg6[%c4_11, %c0_12], %44 {strides = array<i32>} : memref<36x512xf32, #tpu.memory_space<vmem>>, vector<4x256xf32>,
    %46 = vector.extract_strided_slice %39 {offsets = [0, 2], sizes = [4, 256], strides = [1, 1]} : vector<4x384xf32> to vector<4x256xf32>
    %cst_13 = arith.constant 0.000000e+00 : f32
    %47 = vector.broadcast %cst_13 : f32 to vector<4x256xf32>
    %48 = arith.select %36, %46, %47 : vector<4x256xi1>, vector<4x256xf32>
    %c8 = arith.constant 8 : index
    %c0_14 = arith.constant 0 : index
    %49 = vector.load %arg6[%c8, %c0_14] : memref<36x512xf32, #tpu.memory_space<vmem>>, vector<4x256xf32>
    tpu.vector_store %arg6[%c8, %c0_14], %48 {strides = array<i32>} : memref<36x512xf32, #tpu.memory_space<vmem>>, vector<4x256xf32>,
    %50 = vector.extract_strided_slice %39 {offsets = [0, 16], sizes = [4, 256], strides = [1, 1]} : vector<4x384xf32> to vector<4x256xf32>
    %cst_15 = arith.constant 0.000000e+00 : f32
    %51 = vector.broadcast %cst_15 : f32 to vector<4x256xf32>
    %52 = arith.select %31, %50, %51 : vector<4x256xi1>, vector<4x256xf32>
    %c12 = arith.constant 12 : index
    %c0_16 = arith.constant 0 : index
    %53 = vector.load %arg6[%c12, %c0_16] : memref<36x512xf32, #tpu.memory_space<vmem>>, vector<4x256xf32>
    tpu.vector_store %arg6[%c12, %c0_16], %52 {strides = array<i32>} : memref<36x512xf32, #tpu.memory_space<vmem>>, vector<4x256xf32>,
    %54 = vector.extract_strided_slice %39 {offsets = [0, 17], sizes = [4, 256], strides = [1, 1]} : vector<4x384xf32> to vector<4x256xf32>
    %c16 = arith.constant 16 : index
    %c0_17 = arith.constant 0 : index
    %55 = vector.load %arg6[%c16, %c0_17] : memref<36x512xf32, #tpu.memory_space<vmem>>, vector<4x256xf32>
    tpu.vector_store %arg6[%c16, %c0_17], %54 {strides = array<i32>} : memref<36x512xf32, #tpu.memory_space<vmem>>, vector<4x256xf32>,
    %56 = vector.extract_strided_slice %39 {offsets = [0, 18], sizes = [4, 256], strides = [1, 1]} : vector<4x384xf32> to vector<4x256xf32>
    %cst_18 = arith.constant 0.000000e+00 : f32
    %57 = vector.broadcast %cst_18 : f32 to vector<4x256xf32>
    %58 = arith.select %36, %56, %57 : vector<4x256xi1>, vector<4x256xf32>
    %c20 = arith.constant 20 : index
    %c0_19 = arith.constant 0 : index
    %59 = vector.load %arg6[%c20, %c0_19] : memref<36x512xf32, #tpu.memory_space<vmem>>, vector<4x256xf32>
    tpu.vector_store %arg6[%c20, %c0_19], %58 {strides = array<i32>} : memref<36x512xf32, #tpu.memory_space<vmem>>, vector<4x256xf32>,
    %60 = vector.extract_strided_slice %39 {offsets = [0, 32], sizes = [4, 256], strides = [1, 1]} : vector<4x384xf32> to vector<4x256xf32>
    %cst_20 = arith.constant 0.000000e+00 : f32
    %61 = vector.broadcast %cst_20 : f32 to vector<4x256xf32>
    %62 = arith.select %31, %60, %61 : vector<4x256xi1>, vector<4x256xf32>
    %c24 = arith.constant 24 : index
    %c0_21 = arith.constant 0 : index
    %63 = vector.load %arg6[%c24, %c0_21] : memref<36x512xf32, #tpu.memory_space<vmem>>, vector<4x256xf32>
    tpu.vector_store %arg6[%c24, %c0_21], %62 {strides = array<i32>} : memref<36x512xf32, #tpu.memory_space<vmem>>, vector<4x256xf32>,
    %64 = vector.extract_strided_slice %39 {offsets = [0, 33], sizes = [4, 256], strides = [1, 1]} : vector<4x384xf32> to vector<4x256xf32>
    %c28 = arith.constant 28 : index
    %c0_22 = arith.constant 0 : index
    %65 = vector.load %arg6[%c28, %c0_22] : memref<36x512xf32, #tpu.memory_space<vmem>>, vector<4x256xf32>
    tpu.vector_store %arg6[%c28, %c0_22], %64 {strides = array<i32>} : memref<36x512xf32, #tpu.memory_space<vmem>>, vector<4x256xf32>,
    %66 = vector.extract_strided_slice %39 {offsets = [0, 34], sizes = [4, 256], strides = [1, 1]} : vector<4x384xf32> to vector<4x256xf32>
    %cst_23 = arith.constant 0.000000e+00 : f32
    %67 = vector.broadcast %cst_23 : f32 to vector<4x256xf32>
    %68 = arith.select %36, %66, %67 : vector<4x256xi1>, vector<4x256xf32>
    %c32 = arith.constant 32 : index
    %c0_24 = arith.constant 0 : index
    %69 = vector.load %arg6[%c32, %c0_24] : memref<36x512xf32, #tpu.memory_space<vmem>>, vector<4x256xf32>
    tpu.vector_store %arg6[%c32, %c0_24], %68 {strides = array<i32>} : memref<36x512xf32, #tpu.memory_space<vmem>>, vector<4x256xf32>,
    %c1_25 = arith.constant 1 : index
    %c0_26 = arith.constant 0 : index
    %c0_27 = arith.constant 0 : index
    %70 = vector.load %arg2[%c1_25, %c0_26, %c0_27] : memref<2x4x384xbf16, #tpu.memory_space<vmem>>, vector<1x4x384xbf16>
    %71 = vector.shape_cast %70 : vector<1x4x384xbf16> to vector<4x384xbf16>
    %72 = arith.extf %71 : vector<4x384xbf16> to vector<4x384xf32>
    %73 = vector.extract_strided_slice %72 {offsets = [0, 0], sizes = [4, 256], strides = [1, 1]} : vector<4x384xf32> to vector<4x256xf32>
    %cst_28 = arith.constant 0.000000e+00 : f32
    %74 = vector.broadcast %cst_28 : f32 to vector<4x256xf32>
    %75 = arith.select %31, %73, %74 : vector<4x256xi1>, vector<4x256xf32>
    %c0_29 = arith.constant 0 : index
    %c256 = arith.constant 256 : index
    %76 = vector.load %arg6[%c0_29, %c256] : memref<36x512xf32, #tpu.memory_space<vmem>>, vector<4x256xf32>
    tpu.vector_store %arg6[%c0_29, %c256], %75 {strides = array<i32>} : memref<36x512xf32, #tpu.memory_space<vmem>>, vector<4x256xf32>,
    %77 = vector.extract_strided_slice %72 {offsets = [0, 1], sizes = [4, 256], strides = [1, 1]} : vector<4x384xf32> to vector<4x256xf32>
    %c4_30 = arith.constant 4 : index
    %c256_31 = arith.constant 256 : index
    %78 = vector.load %arg6[%c4_30, %c256_31] : memref<36x512xf32, #tpu.memory_space<vmem>>, vector<4x256xf32>
    tpu.vector_store %arg6[%c4_30, %c256_31], %77 {strides = array<i32>} : memref<36x512xf32, #tpu.memory_space<vmem>>, vector<4x256xf32>,
    %79 = vector.extract_strided_slice %72 {offsets = [0, 2], sizes = [4, 256], strides = [1, 1]} : vector<4x384xf32> to vector<4x256xf32>
    %cst_32 = arith.constant 0.000000e+00 : f32
    %80 = vector.broadcast %cst_32 : f32 to vector<4x256xf32>
    %81 = arith.select %36, %79, %80 : vector<4x256xi1>, vector<4x256xf32>
    %c8_33 = arith.constant 8 : index
    %c256_34 = arith.constant 256 : index
    %82 = vector.load %arg6[%c8_33, %c256_34] : memref<36x512xf32, #tpu.memory_space<vmem>>, vector<4x256xf32>
    tpu.vector_store %arg6[%c8_33, %c256_34], %81 {strides = array<i32>} : memref<36x512xf32, #tpu.memory_space<vmem>>, vector<4x256xf32>,
    %83 = vector.extract_strided_slice %72 {offsets = [0, 16], sizes = [4, 256], strides = [1, 1]} : vector<4x384xf32> to vector<4x256xf32>
    %cst_35 = arith.constant 0.000000e+00 : f32
    %84 = vector.broadcast %cst_35 : f32 to vector<4x256xf32>
    %85 = arith.select %31, %83, %84 : vector<4x256xi1>, vector<4x256xf32>
    %c12_36 = arith.constant 12 : index
    %c256_37 = arith.constant 256 : index
    %86 = vector.load %arg6[%c12_36, %c256_37] : memref<36x512xf32, #tpu.memory_space<vmem>>, vector<4x256xf32>
    tpu.vector_store %arg6[%c12_36, %c256_37], %85 {strides = array<i32>} : memref<36x512xf32, #tpu.memory_space<vmem>>, vector<4x256xf32>,
    %87 = vector.extract_strided_slice %72 {offsets = [0, 17], sizes = [4, 256], strides = [1, 1]} : vector<4x384xf32> to vector<4x256xf32>
    %c16_38 = arith.constant 16 : index
    %c256_39 = arith.constant 256 : index
    %88 = vector.load %arg6[%c16_38, %c256_39] : memref<36x512xf32, #tpu.memory_space<vmem>>, vector<4x256xf32>
    tpu.vector_store %arg6[%c16_38, %c256_39], %87 {strides = array<i32>} : memref<36x512xf32, #tpu.memory_space<vmem>>, vector<4x256xf32>,
    %89 = vector.extract_strided_slice %72 {offsets = [0, 18], sizes = [4, 256], strides = [1, 1]} : vector<4x384xf32> to vector<4x256xf32>
    %cst_40 = arith.constant 0.000000e+00 : f32
    %90 = vector.broadcast %cst_40 : f32 to vector<4x256xf32>
    %91 = arith.select %36, %89, %90 : vector<4x256xi1>, vector<4x256xf32>
    %c20_41 = arith.constant 20 : index
    %c256_42 = arith.constant 256 : index
    %92 = vector.load %arg6[%c20_41, %c256_42] : memref<36x512xf32, #tpu.memory_space<vmem>>, vector<4x256xf32>
    tpu.vector_store %arg6[%c20_41, %c256_42], %91 {strides = array<i32>} : memref<36x512xf32, #tpu.memory_space<vmem>>, vector<4x256xf32>,
    %93 = vector.extract_strided_slice %72 {offsets = [0, 32], sizes = [4, 256], strides = [1, 1]} : vector<4x384xf32> to vector<4x256xf32>
    %cst_43 = arith.constant 0.000000e+00 : f32
    %94 = vector.broadcast %cst_43 : f32 to vector<4x256xf32>
    %95 = arith.select %31, %93, %94 : vector<4x256xi1>, vector<4x256xf32>
    %c24_44 = arith.constant 24 : index
    %c256_45 = arith.constant 256 : index
    %96 = vector.load %arg6[%c24_44, %c256_45] : memref<36x512xf32, #tpu.memory_space<vmem>>, vector<4x256xf32>
    tpu.vector_store %arg6[%c24_44, %c256_45], %95 {strides = array<i32>} : memref<36x512xf32, #tpu.memory_space<vmem>>, vector<4x256xf32>,
    %97 = vector.extract_strided_slice %72 {offsets = [0, 33], sizes = [4, 256], strides = [1, 1]} : vector<4x384xf32> to vector<4x256xf32>
    %c28_46 = arith.constant 28 : index
    %c256_47 = arith.constant 256 : index
    %98 = vector.load %arg6[%c28_46, %c256_47] : memref<36x512xf32, #tpu.memory_space<vmem>>, vector<4x256xf32>
    tpu.vector_store %arg6[%c28_46, %c256_47], %97 {strides = array<i32>} : memref<36x512xf32, #tpu.memory_space<vmem>>, vector<4x256xf32>,
    %99 = vector.extract_strided_slice %72 {offsets = [0, 34], sizes = [4, 256], strides = [1, 1]} : vector<4x384xf32> to vector<4x256xf32>
    %cst_48 = arith.constant 0.000000e+00 : f32
    %100 = vector.broadcast %cst_48 : f32 to vector<4x256xf32>
    %101 = arith.select %36, %99, %100 : vector<4x256xi1>, vector<4x256xf32>
    %c32_49 = arith.constant 32 : index
    %c256_50 = arith.constant 256 : index
    %102 = vector.load %arg6[%c32_49, %c256_50] : memref<36x512xf32, #tpu.memory_space<vmem>>, vector<4x256xf32>
    tpu.vector_store %arg6[%c32_49, %c256_50], %101 {strides = array<i32>} : memref<36x512xf32, #tpu.memory_space<vmem>>, vector<4x256xf32>,
    %c0_51 = arith.constant 0 : index
    %c0_52 = arith.constant 0 : index
    %103 = vector.load %arg6[%c0_51, %c0_52] : memref<36x512xf32, #tpu.memory_space<vmem>>, vector<36x512xf32>
    %cst_53 = arith.constant dense<0.000000e+00> : vector<8x512xf32>
    %104 = tpu.matmul %9, %103, %cst_53 {dimension_numbers = #tpu.dot_dimension_numbers<[1], [0], [0], [1], [0, 0, 1, 1], [], []>} : vector<8x36xf32>, vector<36x512xf32>, vector<8x512xf32> -> vector<8x512xf32>
    %105 = vector.broadcast %4 : f32 to vector<8x512xf32>
    %106 = arith.mulf %104, %105 : vector<8x512xf32>
    %c0_54 = arith.constant 0 : index
    %c0_55 = arith.constant 0 : index
    %107 = vector.load %arg4[%c0_54, %c0_55] : memref<8x1xf32, #tpu.memory_space<vmem>>, vector<8x1xf32>
    %108 = vector.broadcast %107 : vector<8x1xf32> to vector<8x512xf32>
    %109 = arith.addf %106, %108 : vector<8x512xf32>
    %110 = math.roundeven %109 : vector<8x512xf32>
    %cst_56 = arith.constant 0.000000e+00 : f32
    %cst_57 = arith.constant 2.550000e+02 : f32
    %111 = vector.broadcast %cst_56 : f32 to vector<8x512xf32>
    %112 = arith.maximumf %111, %110 : vector<8x512xf32>
    %113 = vector.broadcast %cst_57 : f32 to vector<8x512xf32>
    %114 = arith.minimumf %113, %112 : vector<8x512xf32>
    %115 = vector.broadcast %3 : f32 to vector<8x512xf32>
    %116 = arith.subf %114, %115 : vector<8x512xf32>
    %117 = vector.broadcast %2 : f32 to vector<8x512xf32>
    %118 = arith.mulf %116, %117 : vector<8x512xf32>
    %119 = vector.extract_strided_slice %118 {offsets = [0, 0], sizes = [8, 256], strides = [1, 1]} : vector<8x512xf32> to vector<8x256xf32>
    %c0_58 = arith.constant 0 : index
    %c0_59 = arith.constant 0 : index
    %c0_60 = arith.constant 0 : index
    %120 = vector.load %arg5[%c0_58, %c0_59, %c0_60] : memref<2x8x256xf32, #tpu.memory_space<vmem>>, vector<1x8x256xf32>
    %121 = vector.shape_cast %120 : vector<1x8x256xf32> to vector<8x256xf32>
    %122 = vector.shape_cast %119 : vector<8x256xf32> to vector<1x8x256xf32>
    tpu.vector_store %arg5[%c0_58, %c0_59, %c0_60], %122 {strides = array<i32>} : memref<2x8x256xf32, #tpu.memory_space<vmem>>, vector<1x8x256xf32>,
    %123 = vector.extract_strided_slice %118 {offsets = [0, 256], sizes = [8, 256], strides = [1, 1]} : vector<8x512xf32> to vector<8x256xf32>
    %c1_61 = arith.constant 1 : index
    %c0_62 = arith.constant 0 : index
    %c0_63 = arith.constant 0 : index
    %124 = vector.load %arg5[%c1_61, %c0_62, %c0_63] : memref<2x8x256xf32, #tpu.memory_space<vmem>>, vector<1x8x256xf32>
    %125 = vector.shape_cast %124 : vector<1x8x256xf32> to vector<8x256xf32>
    %126 = vector.shape_cast %123 : vector<8x256xf32> to vector<1x8x256xf32>
    tpu.vector_store %arg5[%c1_61, %c0_62, %c0_63], %126 {strides = array<i32>} : memref<2x8x256xf32, #tpu.memory_space<vmem>>, vector<1x8x256xf32>,
    return
  }
  func.func @transform_0(%arg0: i32) -> i32 {
    %c0_i32 = arith.constant 0 : i32
    %c0_i32_0 = arith.constant 0 : i32
    return %c0_i32 : i32
  }
  func.func @transform_1(%arg0: i32) -> (i32, i32, i32) {
    %c0_i32 = arith.constant 0 : i32
    %c0_i32_0 = arith.constant 0 : i32
    %c0_i32_1 = arith.constant 0 : i32
    return %arg0, %c0_i32, %c0_i32_0 : i32, i32, i32
  }
  func.func @transform_2(%arg0: i32) -> (i32, i32) {
    %c0_i32 = arith.constant 0 : i32
    %c0_i32_0 = arith.constant 0 : i32
    %c0_i32_1 = arith.constant 0 : i32
    return %c0_i32, %c0_i32_0 : i32, i32
  }
  func.func @transform_3(%arg0: i32) -> (i32, i32) {
    %c0_i32 = arith.constant 0 : i32
    %c0_i32_0 = arith.constant 0 : i32
    %c0_i32_1 = arith.constant 0 : i32
    return %c0_i32, %c0_i32_0 : i32, i32
  }
  func.func @transform_4(%arg0: i32) -> (i32, i32, i32) {
    %c0_i32 = arith.constant 0 : i32
    %c0_i32_0 = arith.constant 0 : i32
    %c0_i32_1 = arith.constant 0 : i32
    return %arg0, %c0_i32, %c0_i32_0 : i32, i32, i32
  }
}

</mosaic_0001>

<bundles_post_ra>
// kernel: tpu_custom_call.1
= control target key start
LH: loop header
LB: loop body
LE: loop exit
PB: predicated region body
PF: predicated region fallthrough
CT: control target
= control target key end

     0   :  { %9 = vsyncpa [#allocation6], 0  ;;  %s1022_s0 = inlined_call_operand.hbm [shape: f32[5], index: 0, kind: input, shape index: {}]   ;;  %s1023_s1 = inlined_call_operand.vmem [shape: bf16[2,4,384], index: 1, kind: input, shape index: {}]   ;;  %s1024_s2 = inlined_call_operand.hbm [shape: f32[8,36], index: 2, kind: input, shape index: {}]   ;;  %s1025_s3 = inlined_call_operand.vmem [shape: f32[8,1], index: 3, kind: input, shape index: {}]   ;;  %s1026_s4 = inlined_call_operand.hbm [shape: f32[2,8,256], index: 4, kind: output, shape index: {}]  }
   0x1   :  { %10 = vsyncpa [#allocation4], 0 }
   0x2   :  { %11 = vsyncpa [#allocation5], 0  ;;  %s767_s17 = scalar_lea.hbm %s1022_s0, 16 }
   0x3   :  { %p768_p0 = scmp.ne.s32.totalorder %s1022_s0, %s767_s17  ;;  %p771_p1 = scmp.lt.u32.totalorder %s767_s17, %s1022_s0 }
   0x5   :  { %p773_p2 = pnand %p771_p1, %p768_p0 }
   0x7   :  { %776 = shalt.err (!%p773_p2)
}
   0x8   :  { %s827_s22 = smov [#allocation3]   ;;  %s828_s25 = smov [#allocation7]  }
   0x9   :  { %19 = dma.hbm_to_smem %s1022_s0, 16, %s827_s22, [#allocation6]  }
   0xa   :  { %s28_s26 = sshll.u32 %s828_s25, 4  ;;  %s777_s29 = scalar_lea.hbm %s1024_s2, 128  ;;  %s29_s26 = int_to_ptr.vmem [resolvable:$true] %s28_s26 }
   0xb   :  { %p778_p3 = scmp.ne.s32.totalorder %s1024_s2, %s777_s29  ;;  %p781_p4 = scmp.lt.u32.totalorder %s777_s29, %s1024_s2 }
   0xd   :  { %p783_p5 = pnand %p781_p4, %p778_p3 }
   0xf   :  { %786 = shalt.err (!%p783_p5)
}
  0x10   :  { %s787_s8 = scalar_lea.vmem %s29_s26, 128  ;;  %p792_p7 = scmp.lt.s32.totalorder %s29_s26, %s29_s26 }
  0x11   :  { %p788_p6 = scmp.ne.s32.totalorder %s29_s26, %s787_s8  ;;  %p793_p8 = scmp.lt.s32.totalorder %s787_s8, %s787_s8 }
  0x13   :  { %p794_p9 = por %p793_p8, %p792_p7 }
  0x15   :  { %p795_p10 = pnand %p794_p9, %p788_p6 }
  0x17   :  { %798 = shalt.err (!%p795_p10)
}
  0x18   :  { %31 = dma.hbm_to_vmem [thread:$0]  %s1024_s2, 128, %s29_s26, [#allocation4]  }
  0x19   :  { %821 = dma.done.wait [#allocation6], 16  }
  0x1a   :  { %822 = vsyncadd [#allocation6], 4294967280 }
  0x1b   :  { %823 = dma.done.wait [#allocation4], 128  }
  0x1c   :  { %824 = vsyncadd [#allocation4], 4294967168 }
  0x1d   :  { %40 = sfence }
  0x1e   :  { %v90_v0 = vld [vmem:[%s1023_s1] sm:$0x3f]  ;;  %v604_v1 = vld [vmem:[%s1023_s1 + $0x6] sm:$0x3f]  ;;  %v51_v5 = vlaneseq  ;;  %s829_s2 = smov 112   ;;  %s830_s14 = smov 126  }
  0x1f   :  { %v91_v2 = vunpack.c.l.bf16 %v90_v0  ;;  %v231_v3 = vunpack.c.l.bf16 %v604_v1  ;;  %v92_v4 = vunpack.c.h.bf16 %v90_v0  ;;  %v232_v8 = vunpack.c.h.bf16 %v604_v1  ;;  %s831_s1 = smov 127   ;;  %s832_s15 = smov 110   ;;  %v545_v30 = vld [vmem:[%s1025_s3] sm:$0xff] }
  0x20   :  { %v897_v12 = vand.u32 127, %v51_v5  ;;  %s833_s16 = smov 96   ;;  %s834_s17 = smov 111   ;;  %v837_v29 = vmov 0.0   ;;  %v838_v31 = vmov 0   ;;  %vm137_vm2 = vcmask 916480  }
  0x21   :  { %v646_v6 = vpack.i.bf16 %v231_v3, %v91_v2  ;;  %v94_v7 = vcombine.high %v91_v2, %v91_v2  ;;  %v234_v9 = vcombine.high %v231_v3, %v231_v3  ;;  %v102_v11 = vcombine.low %v92_v4, %v92_v4  ;;  %s835_s18 = smov 95   ;;  %s836_s19 = smov 94   ;;  %462 = vmatprep.mubr.f32.mxu0 %v837_v29 }
  0x22   :  { %v242_v15 = vcombine.low %v232_v8, %v232_v8  ;;  %v53_v16 = vadd.s32 128, %v897_v12  ;;  %v58_v17 = vand.u32 15, %v897_v12  ;;  %v101_v24 = vcombine.low %v91_v2, %v91_v2  ;;  %533 = vmatprep.mubr.f32.mxu1 %v837_v29  ;;  %766 = vset.pattern.permute.xlu0 %v838_v31  ;;  %s990_s3 = sld [smem:[#allocation3 + $0x1]]  ;;  %s997_s22 = sld [smem:[#allocation3]] }
  0x23   :  { %647 = vrot.lane.b32.xlu1 %v646_v6, %s829_s2  ;;  %v651_v10 = vpack.i.bf16 %v92_v4, %v94_v7  ;;  %v656_v13 = vpack.i.bf16 %v232_v8, %v234_v9  ;;  %v671_v14 = vpack.i.bf16 %v102_v11, %v91_v2  ;;  %v241_v25 = vcombine.low %v231_v3, %v231_v3  ;;  %s603_s23 = sld [smem:[#allocation3 + $0x4]]  ;;  %s602_s24 = sld [smem:[#allocation3 + $0x3]] }
  0x24   :  { %v65_v18 = vand.u32 15, %v53_v16  ;;  %vm903_vm0 = vcmp.ge.s32.totalorder %v58_v17, 1  ;;  %v681_v20 = vpack.i.bf16 %v242_v15, %v231_v3  ;;  %vm122_vm3 = vcmask 1031168   ;;  %s601_s25 = sld [smem:[#allocation3 + $0x2]]  ;;  %s839_s26 = smov [#allocation8]  }
  0x25   :  { %652 = vrot.lane.b32.xlu0 %v651_v10, %s829_s2  ;;  %v96_v21 = vsel %vm903_vm0, %v91_v2, 0.0  ;;  %v236_v22 = vsel %vm903_vm0, %v231_v3, 0.0  ;;  %v686_v28 = vpack.i.bf16 %v241_v25, %v101_v24  ;;  %vm109_vm5 = vcmask 1039360   ;;  %s587_s27 = sshll.u32 %s839_s26, 4  ;;  %s588_s27 = int_to_ptr.vmem [resolvable:$true] %s587_s27 }
  0x26   :  { %vm911_vm1 = vcmp.ge.s32.totalorder %v65_v18, 1  ;;  %98 = vst [vmem:[#allocation2] sm:$0xf] %v96_v21  ;;  %238 = vst [vmem:[#allocation2 + $0x10] sm:$0xf] %v236_v22  ;;  %vm922_vm4 = vcmp.lt.s32.totalorder %v65_v18, 15  ;;  %p804_p12 = scmp.lt.s32.totalorder %s588_s27, %s588_s27 }
  0x27   :  { %662 = vrot.lane.b32.xlu1 %v651_v10, %s830_s14  ;;  %v97_v26 = vsel %vm911_vm1, %v94_v7, 0.0  ;;  %v237_v27 = vsel %vm911_vm1, %v234_v9, 0.0  ;;  %vm945_vm6 = vcmp.lt.s32.totalorder %v58_v17, 15  ;;  %vm171_vm7 = vcmask 900096   ;;  %s799_s28 = scalar_lea.vmem %s588_s27, 512 }
  0x28   :  { %99 = vst [vmem:[#allocation2 + $0x8] sm:$0xf] %v97_v26  ;;  %239 = vst [vmem:[#allocation2 + $0x18] sm:$0xf] %v237_v27  ;;  %vm192_vm8 = vcmask 785408   ;;  %vm158_vm9 = vcmask 908288   ;;  %v49_v7 = vstv %s997_s22  ;;  %p800_p11 = scmp.ne.s32.totalorder %s588_s27, %s799_s28  ;;  %p805_p13 = scmp.lt.s32.totalorder %s799_s28, %s799_s28 }
  0x29   :  { %657 = vrot.lane.b32.xlu0 %v656_v13, %s829_s2  ;;  %vm207_vm10 = vcmask 777216   ;;  %vm220_vm11 = vcmask 769024   ;;  %vm385_vm12 = vcmask 1043456   ;;  %vm381_vm13 = vcmask 293888  }
  0x2a   :  { %p806_p0 = por %p805_p13, %p804_p12 }
  0x2b   :  { %672 = vrot.lane.b32.xlu1 %v671_v14, %s831_s1 }
  0x2c   :  { %p807_p1 = pnand %p806_p0, %p800_p11 }
  0x2d   :  { %667 = vrot.lane.b32.xlu0 %v656_v13, %s830_s14 }
  0x2f   :  { %682 = vrot.lane.b32.xlu1 %v681_v20, %s831_s1 }
  0x31   :  { %677 = vrot.lane.b32.xlu0 %v646_v6, %s830_s14 }
  0x33   :  { %692 = vrot.lane.b32.xlu1 %v651_v10, %s832_s15 }
  0x35   :  { %687 = vrot.lane.b32.xlu0 %v686_v28, %s831_s1 }
  0x37   :  { %702 = vrot.lane.b32.xlu1 %v646_v6, %s832_s15 }
  0x39   :  { %697 = vrot.lane.b32.xlu0 %v656_v13, %s832_s15 }
  0x3b   :  { %712 = vrot.lane.b32.xlu1 %v656_v13, %s833_s16 }
  0x3d   :  { %707 = vrot.lane.b32.xlu0 %v651_v10, %s833_s16 }
  0x3f   :  { %722 = vrot.lane.b32.xlu1 %v646_v6, %s833_s16 }
  0x41   :  { %717 = vrot.lane.b32.xlu0 %v651_v10, %s834_s17 }
  0x43   :  { %732 = vrot.lane.b32.xlu1 %v656_v13, %s834_s17 }
  0x45   :  { %727 = vrot.lane.b32.xlu0 %v671_v14, %s835_s18 }
  0x47   :  { %742 = vrot.lane.b32.xlu1 %v646_v6, %s834_s17 }
  0x49   :  { %737 = vrot.lane.b32.xlu0 %v681_v20, %s835_s18 }
  0x4b   :  { %752 = vrot.lane.b32.xlu1 %v651_v10, %s836_s19 }
  0x4d   :  { %747 = vrot.lane.b32.xlu0 %v686_v28, %s835_s18 }
  0x4f   :  { %762 = vrot.lane.b32.xlu1 %v646_v6, %s836_s19 }
  0x51   :  { %757 = vrot.lane.b32.xlu0 %v656_v13, %s836_s19 }
  0x55   :  { %548 = vperm.xlu0 %766, %v545_v30  }
  0x95   :  { %v648_v32 = vpop.permute.xlu1 %647 }
  0x96   :  { %v649_v33 = vunpack.i.l.bf16 %v648_v32  ;;  %v650_v50 = vunpack.i.h.bf16 %v648_v32 }
  0x97   :  { %v653_v34 = vpop.permute.xlu0 %652 }
  0x98   :  { %v655_v35 = vunpack.i.h.bf16 %v653_v34  ;;  %v654_v36 = vunpack.i.l.bf16 %v653_v34 }
  0x99   :  { %v663_v37 = vpop.permute.xlu1 %662 }
  0x9a   :  { %v138_v39 = vsel %vm137_vm2, %v649_v33, %v654_v36  ;;  %v139_v40 = vsel %vm137_vm2, %v654_v36, %v655_v35  ;;  %v665_v41 = vunpack.i.h.bf16 %v663_v37  ;;  %v664_v42 = vunpack.i.l.bf16 %v663_v37 }
  0x9b   :  { %v142_v43 = vsel %vm903_vm0, %v138_v39, 0.0  ;;  %v143_v44 = vsel %vm911_vm1, %v139_v40, 0.0  ;;  %v658_v45 = vpop.permute.xlu0 %657 }
  0x9c   :  { %v146_v46 = vrot.slane %v142_v43, 4  ;;  %v147_v47 = vrot.slane %v143_v44, 4  ;;  %v124_v48 = vsel %vm122_vm3, %v664_v42, %v665_v41  ;;  %v660_v49 = vunpack.i.h.bf16 %v658_v45 }
  0x9d   :  { %v128_v51 = vsel %vm922_vm4, %v124_v48, 0.0  ;;  %v659_v52 = vunpack.i.l.bf16 %v658_v45  ;;  %v673_v53 = vpop.permute.xlu1 %672 }
  0x9e   :  { %150 = vst [vmem:[#allocation2 + $0x20] sm:$0xf0] %v146_v46  ;;  %151 = vst [vmem:[#allocation2 + $0x28] sm:$0xf0] %v147_v47  ;;  %v675_v54 = vunpack.i.h.bf16 %v673_v53  ;;  %v674_v55 = vunpack.i.l.bf16 %v673_v53 }
  0x9f   :  { %130 = vst [vmem:[#allocation2 + $0x28] sm:$0xf] %v128_v51  ;;  %v275_v56 = vsel %vm137_vm2, %v650_v50, %v659_v52  ;;  %v276_v57 = vsel %vm137_vm2, %v659_v52, %v660_v49  ;;  %v668_v58 = vpop.permute.xlu0 %667 }
  0xa0   :  { %v279_v59 = vsel %vm903_vm0, %v275_v56, 0.0  ;;  %v280_v60 = vsel %vm911_vm1, %v276_v57, 0.0  ;;  %v111_v61 = vsel %vm109_vm5, %v674_v55, %v675_v54  ;;  %v670_v62 = vunpack.i.h.bf16 %v668_v58 }
  0xa1   :  { %v283_v63 = vrot.slane %v279_v59, 4  ;;  %v284_v0 = vrot.slane %v280_v60, 4  ;;  %115 = vst [vmem:[#allocation2 + $0x8] sm:$0xf0] %v111_v61  ;;  %v669_v1 = vunpack.i.l.bf16 %v668_v58  ;;  %v683_v2 = vpop.permute.xlu1 %682 }
  0xa2   :  { %v685_v3 = vunpack.i.h.bf16 %v683_v2  ;;  %v684_v4 = vunpack.i.l.bf16 %v683_v2 }
  0xa3   :  { %287 = vst [vmem:[#allocation2 + $0x30] sm:$0xf0] %v283_v63  ;;  %288 = vst [vmem:[#allocation2 + $0x38] sm:$0xf0] %v284_v0  ;;  %v262_v5 = vsel %vm122_vm3, %v669_v1, %v670_v62  ;;  %v678_v6 = vpop.permute.xlu0 %677 }
  0xa4   :  { %v266_v8 = vsel %vm922_vm4, %v262_v5, 0.0  ;;  %v250_v9 = vsel %vm109_vm5, %v684_v4, %v685_v3  ;;  %v680_v10 = vunpack.i.h.bf16 %v678_v6  ;;  %v679_v11 = vunpack.i.l.bf16 %v678_v6 }
  0xa5   :  { %268 = vst [vmem:[#allocation2 + $0x38] sm:$0xf] %v266_v8  ;;  %254 = vst [vmem:[#allocation2 + $0x18] sm:$0xf0] %v250_v9  ;;  %v693_v13 = vpop.permute.xlu1 %692 }
  0xa6   :  { %v123_v14 = vsel %vm122_vm3, %v679_v11, %v664_v42  ;;  %v261_v15 = vsel %vm122_vm3, %v680_v10, %v669_v1  ;;  %v695_v12 = vunpack.i.h.bf16 %v693_v13  ;;  %v694_v16 = vunpack.i.l.bf16 %v693_v13  ;;  %v366_v26 = vld [vmem:[#allocation2 + $0x28] sm:$0xff] }
  0xa7   :  { %v127_v17 = vsel %vm945_vm6, %v123_v14, 0.0  ;;  %v265_v18 = vsel %vm945_vm6, %v261_v15, 0.0  ;;  %v688_v20 = vpop.permute.xlu0 %687 }
  0xa8   :  { %129 = vst [vmem:[#allocation2 + $0x20] sm:$0xf] %v127_v17  ;;  %267 = vst [vmem:[#allocation2 + $0x30] sm:$0xf] %v265_v18  ;;  %v173_v21 = vsel %vm171_vm7, %v694_v16, %v695_v12  ;;  %v690_v22 = vunpack.i.h.bf16 %v688_v20  ;;  %v689_v24 = vunpack.i.l.bf16 %v688_v20  ;;  %v362_v25 = vld [vmem:[#allocation2 + $0x8] sm:$0xff] }
  0xa9   :  { %v177_v27 = vsel %vm922_vm4, %v173_v21, 0.0  ;;  %v703_v28 = vpop.permute.xlu1 %702  ;;  %v611_v29 = vpack.c.bf16 %v366_v26, %v362_v25 }
  0xaa   :  { %v181_v30 = vrot.slane %v177_v27, 4  ;;  %v249_v31 = vsel %vm109_vm5, %v690_v22, %v684_v4  ;;  %v110_v32 = vsel %vm109_vm5, %v689_v24, %v674_v55  ;;  %v705_v33 = vunpack.i.h.bf16 %v703_v28 }
  0xab   :  { %253 = vst [vmem:[#allocation2 + $0x10] sm:$0xf0] %v249_v31  ;;  %114 = vst [vmem:[#allocation2] sm:$0xf0] %v110_v32  ;;  %v704_v34 = vunpack.i.l.bf16 %v703_v28  ;;  %v698_v35 = vpop.permute.xlu0 %697  ;;  %612 = vmatprep.subr.bf16.mxu0 %v611_v29 }
  0xac   :  { %185 = vst [vmem:[#allocation2 + $0x48] sm:$0xf0] %v181_v30  ;;  %v700_v36 = vunpack.i.h.bf16 %v698_v35  ;;  %v699_v37 = vunpack.i.l.bf16 %v698_v35  ;;  %v364_v39 = vld [vmem:[#allocation2 + $0x18] sm:$0xff] }
  0xad   :  { %v368_v40 = vld [vmem:[#allocation2 + $0x38] sm:$0xff]  ;;  %v172_v41 = vsel %vm171_vm7, %v704_v34, %v694_v16  ;;  %v713_v42 = vpop.permute.xlu1 %712 }
  0xae   :  { %v619_v43 = vpack.c.bf16 %v368_v40, %v364_v39  ;;  %v176_v44 = vsel %vm945_vm6, %v172_v41, 0.0  ;;  %v307_v45 = vsel %vm171_vm7, %v705_v33, %v699_v37  ;;  %v308_v46 = vsel %vm171_vm7, %v699_v37, %v700_v36 }
  0xaf   :  { %v715_v47 = vunpack.i.h.bf16 %v713_v42  ;;  %v180_v48 = vrot.slane %v176_v44, 4  ;;  %v311_v49 = vsel %vm945_vm6, %v307_v45, 0.0  ;;  %v312_v50 = vsel %vm922_vm4, %v308_v46, 0.0  ;;  %v708_v52 = vpop.permute.xlu0 %707  ;;  %v365_v59 = vld [vmem:[#allocation2 + $0x20] sm:$0xff]  ;;  %v367_v2 = vld [vmem:[#allocation2 + $0x30] sm:$0xff] }
  0xb0   :  { %v714_v51 = vunpack.i.l.bf16 %v713_v42  ;;  %620 = vmatprep.subr.bf16.mxu1 %v619_v43  ;;  %v315_v53 = vrot.slane %v311_v49, 4  ;;  %v316_v54 = vrot.slane %v312_v50, 4  ;;  %v710_v55 = vunpack.i.h.bf16 %v708_v52 }
  0xb1   :  { %v709_v56 = vunpack.i.l.bf16 %v708_v52  ;;  %184 = vst [vmem:[#allocation2 + $0x40] sm:$0xf0] %v180_v48  ;;  %v723_v58 = vpop.permute.xlu1 %722 }
  0xb2   :  { %v328_v57 = vsel %vm192_vm8, %v714_v51, %v715_v47  ;;  %319 = vst [vmem:[#allocation2 + $0x50] sm:$0xf0] %v315_v53  ;;  %320 = vst [vmem:[#allocation2 + $0x58] sm:$0xf0] %v316_v54  ;;  %v725_v62 = vunpack.i.h.bf16 %v723_v58  ;;  %v724_v63 = vunpack.i.l.bf16 %v723_v58  ;;  %v361_v0 = vld [vmem:[#allocation2] sm:$0xff]  ;;  %v363_v1 = vld [vmem:[#allocation2 + $0x10] sm:$0xff] }
  0xb3   :  { %v332_v60 = vsel %vm911_vm1, %v328_v57, 0.0  ;;  %v194_v61 = vsel %vm192_vm8, %v709_v56, %v710_v55  ;;  %v718_v4 = vpop.permute.xlu0 %717  ;;  %v613_v5 = vpack.c.bf16 %v365_v59, %v361_v0  ;;  %v621_v6 = vpack.c.bf16 %v367_v2, %v363_v1 }
  0xb4   :  { %334 = vst [vmem:[#allocation2 + $0x78] sm:$0xf] %v332_v60  ;;  %v198_v3 = vsel %vm911_vm1, %v194_v61, 0.0  ;;  %v193_v8 = vsel %vm192_vm8, %v724_v63, %v709_v56  ;;  %v327_v9 = vsel %vm192_vm8, %v725_v62, %v714_v51  ;;  %v720_v10 = vunpack.i.h.bf16 %v718_v4  ;;  %v46_v61 = vld [vmem:[#allocation7] sm:$0xff] }
  0xb5   :  { %200 = vst [vmem:[#allocation2 + $0x68] sm:$0xf] %v198_v3  ;;  %v719_v11 = vunpack.i.l.bf16 %v718_v4  ;;  %v197_v13 = vsel %vm903_vm0, %v193_v8, 0.0  ;;  %v331_v14 = vsel %vm903_vm0, %v327_v9, 0.0  ;;  %v733_v15 = vpop.permute.xlu1 %732  ;;  %614 = vmatpush1.bf16.msra.mxu0 %v613_v5  ;;  %622 = vmatpush1.bf16.msra.mxu1 %v621_v6  ;;  %v47_v62 = vstv %s990_s3 }
  0xb6   :  { %199 = vst [vmem:[#allocation2 + $0x60] sm:$0xf] %v197_v13  ;;  %333 = vst [vmem:[#allocation2 + $0x70] sm:$0xf] %v331_v14  ;;  %v735_v12 = vunpack.i.h.bf16 %v733_v15  ;;  %v734_v16 = vunpack.i.l.bf16 %v733_v15  ;;  %v48_v3 = vsub.f32 %v46_v61, %v47_v62 }
  0xb7   :  { %v160_v23 = vsel %vm158_vm9, %v719_v11, %v720_v10  ;;  %v728_v17 = vpop.permute.xlu0 %727 }
  0xb8   :  { %164 = vst [vmem:[#allocation2 + $0x48] sm:$0xf] %v160_v23  ;;  %v296_v18 = vsel %vm158_vm9, %v734_v16, %v735_v12  ;;  %v730_v20 = vunpack.i.h.bf16 %v728_v17  ;;  %v729_v21 = vunpack.i.l.bf16 %v728_v17  ;;  %v50_v38 = vmul.f32 %v49_v7, %v48_v3 }
  0xb9   :  { %300 = vst [vmem:[#allocation2 + $0x58] sm:$0xf] %v296_v18  ;;  %v743_v22 = vpop.permute.xlu1 %742 }
  0xba   :  { %v209_v19 = vsel %vm207_vm10, %v729_v21, %v730_v20  ;;  %v745_v24 = vunpack.i.h.bf16 %v743_v22  ;;  %v744_v25 = vunpack.i.l.bf16 %v743_v22 }
  0xbb   :  { %213 = vst [vmem:[#allocation2 + $0x68] sm:$0xf0] %v209_v19  ;;  %v738_v26 = vpop.permute.xlu0 %737 }
  0xbc   :  { %v159_v27 = vsel %vm158_vm9, %v744_v25, %v719_v11  ;;  %v295_v28 = vsel %vm158_vm9, %v745_v24, %v734_v16  ;;  %v740_v29 = vunpack.i.h.bf16 %v738_v26  ;;  %v739_v30 = vunpack.i.l.bf16 %v738_v26 }
  0xbd   :  { %163 = vst [vmem:[#allocation2 + $0x40] sm:$0xf] %v159_v27  ;;  %299 = vst [vmem:[#allocation2 + $0x50] sm:$0xf] %v295_v28  ;;  %v753_v31 = vpop.permute.xlu1 %752  ;;  %v540_v11 = vstv %s603_s23 }
  0xbe   :  { %v342_v32 = vsel %vm207_vm10, %v739_v30, %v740_v29  ;;  %v755_v33 = vunpack.i.h.bf16 %v753_v31  ;;  %v754_v34 = vunpack.i.l.bf16 %v753_v31 }
  0xbf   :  { %346 = vst [vmem:[#allocation2 + $0x78] sm:$0xf0] %v342_v32  ;;  %v748_v35 = vpop.permute.xlu0 %747  ;;  %v370_v46 = vld [vmem:[#allocation2 + $0x48] sm:$0xff] }
  0xc0   :  { %v222_v36 = vsel %vm220_vm11, %v754_v34, %v755_v33  ;;  %v750_v37 = vunpack.i.h.bf16 %v748_v35  ;;  %v749_v39 = vunpack.i.l.bf16 %v748_v35  ;;  %v372_v56 = vld [vmem:[#allocation2 + $0x58] sm:$0xff]  ;;  %v567_v33 = vstv %s602_s24 }
  0xc1   :  { %v226_v40 = vsel %vm922_vm4, %v222_v36, 0.0  ;;  %v763_v41 = vpop.permute.xlu1 %762 }
  0xc2   :  { %228 = vst [vmem:[#allocation2 + $0x88] sm:$0xf] %v226_v40  ;;  %v208_v42 = vsel %vm207_vm10, %v749_v39, %v729_v21  ;;  %v341_v43 = vsel %vm207_vm10, %v750_v37, %v739_v30  ;;  %v765_v44 = vunpack.i.h.bf16 %v763_v41  ;;  %v764_v45 = vunpack.i.l.bf16 %v763_v41  ;;  %v374_v47 = vld [vmem:[#allocation2 + $0x68] sm:$0xff] }
  0xc3   :  { %212 = vst [vmem:[#allocation2 + $0x60] sm:$0xf0] %v208_v42  ;;  %345 = vst [vmem:[#allocation2 + $0x70] sm:$0xf0] %v341_v43  ;;  %v758_v48 = vpop.permute.xlu0 %757  ;;  %v615_v49 = vpack.c.bf16 %v374_v47, %v370_v46  ;;  %v572_v39 = vstv %s601_s25 }
  0xc4   :  { %v221_v50 = vsel %vm220_vm11, %v764_v45, %v754_v34  ;;  %v760_v51 = vunpack.i.h.bf16 %v758_v48  ;;  %v759_v52 = vunpack.i.l.bf16 %v758_v48  ;;  %v369_v63 = vld [vmem:[#allocation2 + $0x40] sm:$0xff]  ;;  %v371_v1 = vld [vmem:[#allocation2 + $0x50] sm:$0xff] }
  0xc5   :  { %v225_v53 = vsel %vm945_vm6, %v221_v50, 0.0  ;;  %616 = vmatprep.subr.bf16.mxu0 %v615_v49 }
  0xc6   :  { %227 = vst [vmem:[#allocation2 + $0x80] sm:$0xf] %v225_v53  ;;  %v353_v54 = vsel %vm220_vm11, %v765_v44, %v759_v52  ;;  %v354_v55 = vsel %vm220_vm11, %v759_v52, %v760_v51  ;;  %v376_v57 = vld [vmem:[#allocation2 + $0x78] sm:$0xff] }
  0xc7   :  { %v357_v58 = vsel %vm945_vm6, %v353_v54, 0.0  ;;  %v358_v59 = vsel %vm922_vm4, %v354_v55, 0.0  ;;  %v623_v60 = vpack.c.bf16 %v376_v57, %v372_v56 }
  0xc8   :  { %359 = vst [vmem:[#allocation2 + $0x90] sm:$0xf] %v357_v58  ;;  %360 = vst [vmem:[#allocation2 + $0x98] sm:$0xf] %v358_v59 }
  0xc9   :  { %624 = vmatprep.subr.bf16.mxu1 %v623_v60  ;;  %v378_v6 = vld [vmem:[#allocation2 + $0x88] sm:$0xf] }
  0xca   :  { %v373_v0 = vld [vmem:[#allocation2 + $0x60] sm:$0xff]  ;;  %v375_v2 = vld [vmem:[#allocation2 + $0x70] sm:$0xff] }
  0xcb   :  { %v617_v4 = vpack.c.bf16 %v373_v0, %v369_v63  ;;  %v625_v5 = vpack.c.bf16 %v375_v2, %v371_v1 }
  0xcd   :  { %618 = vmatpush1.bf16.msra.mxu0 %v617_v4  ;;  %626 = vmatpush1.bf16.msra.mxu1 %v625_v5  ;;  %v377_v10 = vld [vmem:[#allocation2 + $0x80] sm:$0xf] }
  0xce   :  { %605 = vmatprep.subr.msk.mxu0 %vm385_vm12, %v378_v6 }
  0xcf   :  { %v380_v8 = vld [vmem:[#allocation2 + $0x98] sm:$0xf]  ;;  %v379_v9 = vld [vmem:[#allocation2 + $0x90] sm:$0xf] }
  0xd0   :  { %608 = vmatprep.subr.msk.mxu1 %vm385_vm12, %v380_v8 }
  0xd1   :  { %606 = vmatpush1.msk.msra.mxu0 %vm385_vm12, %v377_v10  ;;  %609 = vmatpush1.msk.msra.mxu1 %vm385_vm12, %v379_v9 }
  0xd2   :  { %607 = vmatmul.mubr.msk.f32.vlgmr.msra.gmra.mrb[0].mxu0 %vm381_vm13, %v50_v38  ;;  %610 = vmatmul.mubr.msk.f32.vlgmr.msra.gmra.mrb[0].mxu1 %vm381_vm13, %v50_v38 }
  0xd4   :  { %v549_v13 = vpop.permute.xlu0 %548 }
 0x1a5   :  { %v464_v14 = vpop.f32.mrb[0].mxu0  ;;  %v535_v15 = vpop.f32.mrb[0].mxu1 }
 0x1a6   :  { %v541_v23 = vmul.f32 %v540_v11, %v464_v14  ;;  %v543_v12 = vmul.f32 %v540_v11, %v535_v15  ;;  %v466_v16 = vpop.f32.mrb[1].mxu0  ;;  %v537_v17 = vpop.f32.mrb[1].mxu1 }
 0x1a7   :  { %v542_v18 = vmul.f32 %v540_v11, %v466_v16  ;;  %v544_v20 = vmul.f32 %v540_v11, %v537_v17 }
 0x1a8   :  { %v551_v21 = vadd.f32 %v549_v13, %v541_v23  ;;  %v553_v22 = vadd.f32 %v549_v13, %v543_v12 }
 0x1a9   :  { %v552_v19 = vadd.f32 %v549_v13, %v542_v18  ;;  %v554_v24 = vadd.f32 %v549_v13, %v544_v20 }
 0x1aa   :  { %v627_v25 = vround.rtne.f32 %v551_v21  ;;  %v629_v26 = vround.rtne.f32 %v553_v22 }
 0x1ab   :  { %v628_v27 = vround.rtne.f32 %v552_v19  ;;  %v630_v28 = vround.rtne.f32 %v554_v24 }
 0x1ac   :  { %v559_v29 = vmax.f32 %v627_v25, 0.0  ;;  %v561_v30 = vmax.f32 %v629_v26, 0.0 }
 0x1ad   :  { %v560_v31 = vmax.f32 %v628_v27, 0.0  ;;  %v562_v32 = vmax.f32 %v630_v28, 0.0 }
 0x1ae   :  { %v563_v34 = vmin.f32 %v559_v29, 255.0  ;;  %v565_v35 = vmin.f32 %v561_v30, 255.0 }
 0x1af   :  { %v564_v36 = vmin.f32 %v560_v31, 255.0  ;;  %v566_v37 = vmin.f32 %v562_v32, 255.0 }
 0x1b0   :  { %v568_v40 = vsub.f32 %v563_v34, %v567_v33  ;;  %v570_v41 = vsub.f32 %v565_v35, %v567_v33 }
 0x1b1   :  { %v569_v42 = vsub.f32 %v564_v36, %v567_v33  ;;  %v571_v43 = vsub.f32 %v566_v37, %v567_v33 }
 0x1b2   :  { %v573_v44 = vmul.f32 %v572_v39, %v568_v40  ;;  %v575_v45 = vmul.f32 %v572_v39, %v570_v41 }
 0x1b3   :  { %v574_v46 = vmul.f32 %v572_v39, %v569_v42  ;;  %v576_v47 = vmul.f32 %v572_v39, %v571_v43 }
 0x1b4   :  { %577 = vst [vmem:[#allocation8] sm:$0xff] %v573_v44  ;;  %580 = vst [vmem:[#allocation8 + $0x10] sm:$0xff] %v575_v45 }
 0x1b5   :  { %578 = vst [vmem:[#allocation8 + $0x8] sm:$0xff] %v574_v46  ;;  %581 = vst [vmem:[#allocation8 + $0x18] sm:$0xff] %v576_v47 }
 0x1b6   :  { %810 = shalt.err (!%p807_p1)
}
 0x1b7   :  { %s811_s5 = scalar_lea.hbm %s1026_s4, 512 }
 0x1b8   :  { %p812_p2 = scmp.ne.s32.totalorder %s1026_s4, %s811_s5  ;;  %p815_p3 = scmp.lt.u32.totalorder %s811_s5, %s1026_s4 }
 0x1ba   :  { %p817_p4 = pnand %p815_p3, %p812_p2 }
 0x1bc   :  { %820 = shalt.err (!%p817_p4)
}
 0x1bd   :  { %s840_s9 = smov 256   ;;  %s841_s10 = smov 16  }
 0x1be   :  { %593 = dma.vmem_to_hbm [thread:$0]  %s588_s27, 512, %s1026_s4, [#allocation5], %s840_s9, %s840_s9, %s841_s10  }
 0x1bf   :  { %825 = dma.done.wait [#allocation5], 512  }
 0x1c0   :  { %826 = vsyncadd [#allocation5], 4294966784 }
 0x1c1   :  { %597 = vsyncpa [#allocation4], 1 }
 0x1c2   :  { %598 = vsyncpa [#allocation5], 1 }
 0x1c3   :  { %599 = vsyncpa [#allocation6], 1 }

</bundles_post_ra>
